<compile_context>
chip_gen: v5e
topology: v5e:2x2
jax: 0.10.0
libtpu: 0.0.40
codegen_flags: <defaults>
</compile_context>

<pallas_src>
import jax
import jax.numpy as jnp
from jax.experimental import pallas as pl
from jax.experimental.pallas import tpu as pltpu

LANE = 128      # lane width of a vreg (last dim)
SUBLANE = 8     # sublane width (second-to-last dim)


def _round_up(n: int, m: int) -> int:
    return ((n + m - 1) // m) * m


def _num_tensorcores() -> int:
    """2 TensorCores per device on v4/v7x (megacore-style), 1 on v5e/v6e."""
    try:
        kind = jax.devices()[0].device_kind.lower()
    except Exception:
        return 1
    return 2 if ("v7" in kind or "v4" in kind) else 1


def actor_kernel(x_ref, w1_ref, b1_ref, w2_ref, b2_ref, out_ref):
    # Backbone Linear + ReLU: bf16 operands on the MXU, f32 accumulate, f32 elementwise.
    x = x_ref[...].astype(jnp.bfloat16)
    h = jnp.dot(x, w1_ref[...], preferred_element_type=jnp.float32)
    h = jnp.maximum(h + b1_ref[...], 0.0)

    # Output Linear to (padded) action width. The padded lanes of b2 carry -inf
    # (baked in at prep time), so they fall out of the softmax normalizer exactly.
    logits = jnp.dot(h.astype(jnp.bfloat16), w2_ref[...],
                     preferred_element_type=jnp.float32)
    logits = logits + b2_ref[...]

    # Numerically stable log-softmax (XLU reductions, EUP exp/log).
    m = jnp.max(logits, axis=-1, keepdims=True)
    shifted = logits - m
    lse = jnp.log(jnp.sum(jnp.exp(shifted), axis=-1, keepdims=True))
    out_ref[...] = (shifted - lse).astype(out_ref.dtype)


def prepare_actor_params(w1, b1, w2, b2):
    """One-time layout prep: zero-pad hidden/action dims to the 128-lane width, store
    matmul weights in bf16 (biases stay f32), and bake the padded-action-lane mask
    (-inf) into the output bias so the kernel needs no per-step masking."""
    state_size, hidden = w1.shape
    action_size = w2.shape[1]
    h_pad = _round_up(hidden, LANE)
    a_pad = _round_up(action_size, LANE)

    w1p = jnp.pad(w1, ((0, 0), (0, h_pad - hidden))).astype(jnp.bfloat16)
    b1p = jnp.pad(b1.reshape(1, -1), ((0, 0), (0, h_pad - hidden))).astype(jnp.float32)
    w2p = jnp.pad(w2, ((0, h_pad - hidden), (0, a_pad - action_size))).astype(jnp.bfloat16)
    # w2's padded columns are exact zeros, so padded logits equal the bias exactly;
    # putting -inf there keeps the log-softmax normalizer exact with no in-kernel mask.
    b2p = jnp.concatenate(
        [b2.reshape(1, -1).astype(jnp.float32),
         jnp.full((1, a_pad - action_size), -jnp.inf, dtype=jnp.float32)],
        axis=1)
    return (w1p, b1p, w2p, b2p), action_size


def _choose_batch_tile(batch: int, *, max_tile: int = 4096):
    """Pick a batch tile that (a) divides the 8-rounded batch (no wrapper padding for
    batches that are multiples of 8), (b) is as large as possible within `max_tile`
    (per-step overhead amortization; ~3 MiB of double-buffered tiles at 4096 rows,
    well inside every generation's scoped-VMEM default), and (c) leaves >= 2 grid
    steps per TensorCore on multi-TC chips so the parallel batch axis uses both."""
    b8 = _round_up(batch, SUBLANE)
    num_tc = _num_tensorcores()
    min_steps = 1 if num_tc == 1 else 2 * num_tc
    target = -(-b8 // min_steps)                       # ceil div
    tb = min(max_tile, max(SUBLANE, _round_up(target, SUBLANE)))
    while b8 % tb != 0:                                # largest multiple of 8 dividing b8
        tb -= SUBLANE
    return tb, b8


def actor_forward(x, params, action_size, *, max_batch_tile=4096):
    w1, b1, w2, b2 = params
    batch, state_size = x.shape
    h_pad = w1.shape[1]
    a_pad = w2.shape[1]

    tb, b_pad = _choose_batch_tile(batch, max_tile=max_batch_tile)
    if b_pad != batch:  # only when batch itself is not a multiple of 8
        x = jnp.pad(x, ((0, b_pad - batch), (0, 0)))

    grid = (b_pad // tb,)

    cost = pl.CostEstimate(
        flops=2 * b_pad * (state_size * h_pad + h_pad * a_pad),
        transcendentals=b_pad * (a_pad + 1),
        bytes_accessed=(b_pad * state_size * 4        # x (f32)
                        + w1.size * 2 + b1.size * 4   # bf16 weights, f32 biases
                        + w2.size * 2 + b2.size * 4
                        + b_pad * a_pad * 2),         # out (bf16)
    )

    out = pl.pallas_call(
        actor_kernel,
        out_shape=jax.ShapeDtypeStruct((b_pad, a_pad), jnp.bfloat16),
        grid=grid,
        in_specs=[
            pl.BlockSpec((tb, state_size), lambda i: (i, 0)),     # x: tiled over batch
            pl.BlockSpec((state_size, h_pad), lambda i: (0, 0)),  # weights: resident
            pl.BlockSpec((1, h_pad), lambda i: (0, 0)),
            pl.BlockSpec((h_pad, a_pad), lambda i: (0, 0)),
            pl.BlockSpec((1, a_pad), lambda i: (0, 0)),
        ],
        out_specs=pl.BlockSpec((tb, a_pad), lambda i: (i, 0)),
        compiler_params=pltpu.CompilerParams(
            dimension_semantics=("parallel",),   # shard batch steps across TCs on v7x
        ),
        cost_estimate=cost,
    )(x, w1, b1, w2, b2)

    # Single fused slice + upcast back to the module's (batch, action_size) f32 output.
    return out[:batch, :action_size].astype(jnp.float32)


def _reference(x, w1, b1, w2, b2):
    # Matches the kernel's numerics: bf16 matmul operands, f32 accumulate/elementwise.
    h = jnp.dot(x.astype(jnp.bfloat16), w1.astype(jnp.bfloat16),
                preferred_element_type=jnp.float32) + b1
    h = jnp.maximum(h, 0.0)
    logits = jnp.dot(h.astype(jnp.bfloat16), w2.astype(jnp.bfloat16),
                     preferred_element_type=jnp.float32) + b2
    return jax.nn.log_softmax(logits, axis=-1)


if __name__ == "__main__":
    # Small shapes implied by the module: state_size -> hidden -> action_size.
    # (Batch 256 so multi-step tiling is exercised on multi-TC chips.)
    batch, state_size, hidden, action_size = 256, 32, 64, 16

    key = jax.random.PRNGKey(0)
    kx, k1, kb1, k2, kb2 = jax.random.split(key, 5)

    x = jax.random.normal(kx, (batch, state_size), dtype=jnp.float32)
    # Deterministic synthetic parameters (Linear weights stored as (in, out)).
    w1 = jax.random.normal(k1, (state_size, hidden), dtype=jnp.float32) * 0.1
    b1 = jax.random.normal(kb1, (1, hidden), dtype=jnp.float32) * 0.1
    w2 = jax.random.normal(k2, (hidden, action_size), dtype=jnp.float32) * 0.1
    b2 = jax.random.normal(kb2, (1, action_size), dtype=jnp.float32) * 0.1

    params, a_size = prepare_actor_params(w1, b1, w2, b2)

    out = actor_forward(x, params, a_size)
    jax.block_until_ready(out)

    ref = _reference(x, w1, b1, w2, b2)
    assert out.shape == (batch, action_size)
    # bf16 output rounding (~0.4% rel) is the dominant difference vs the f32 reference.
    assert jnp.allclose(out, ref, atol=5e-2, rtol=1e-2), "mismatch vs JAX reference"
    # log_softmax rows should exp-sum to ~1 (within bf16 rounding of the log-probs).
    assert jnp.allclose(jnp.exp(out).sum(-1), 1.0, atol=1e-2)

    print("KERNEL_OK")
</pallas_src>

<mosaic_0001>
module attributes {stable_mosaic.version = 11 : i64} {
  func.func @actor_kernel(%arg0: i32, %arg1: memref<256x32xf32, #tpu.memory_space<vmem>>, %arg2: memref<32x128xbf16, #tpu.memory_space<vmem>>, %arg3: memref<1x128xf32, #tpu.memory_space<vmem>>, %arg4: memref<128x128xbf16, #tpu.memory_space<vmem>>, %arg5: memref<1x128xf32, #tpu.memory_space<vmem>>, %arg6: memref<256x128xbf16, #tpu.memory_space<vmem>>) attributes {dimension_semantics = [#tpu.dimension_semantics<parallel>], iteration_bounds = array<i64: 1>, scalar_prefetch = 0 : i64, scratch_operands = 0 : i64, tpu.core_type = #tpu.core_type<tc>, window_params = [{transform_indices = @transform_0, window_bounds = array<i64: 256, 32>}, {pipeline_mode = #tpu.pipeline_mode<synchronous>, transform_indices = @transform_1, window_bounds = array<i64: 32, 128>}, {pipeline_mode = #tpu.pipeline_mode<synchronous>, transform_indices = @transform_2, window_bounds = array<i64: 1, 128>}, {pipeline_mode = #tpu.pipeline_mode<synchronous>, transform_indices = @transform_3, window_bounds = array<i64: 128, 128>}, {pipeline_mode = #tpu.pipeline_mode<synchronous>, transform_indices = @transform_4, window_bounds = array<i64: 1, 128>}, {transform_indices = @transform_5, window_bounds = array<i64: 256, 128>}]} {
    %c0 = arith.constant 0 : index
    %c0_0 = arith.constant 0 : index
    %0 = vector.load %arg1[%c0, %c0_0] : memref<256x32xf32, #tpu.memory_space<vmem>>, vector<256x32xf32>
    %1 = arith.truncf %0 : vector<256x32xf32> to vector<256x32xbf16>
    %c0_1 = arith.constant 0 : index
    %c0_2 = arith.constant 0 : index
    %2 = vector.load %arg2[%c0_1, %c0_2] : memref<32x128xbf16, #tpu.memory_space<vmem>>, vector<32x128xbf16>
    %cst = arith.constant dense<0.000000e+00> : vector<256x128xf32>
    %3 = tpu.matmul %1, %2, %cst {dimension_numbers = #tpu.dot_dimension_numbers<[1], [0], [0], [1], [0, 0, 1, 1], [], []>} : vector<256x32xbf16>, vector<32x128xbf16>, vector<256x128xf32> -> vector<256x128xf32>
    %c0_3 = arith.constant 0 : index
    %c0_4 = arith.constant 0 : index
    %4 = vector.load %arg3[%c0_3, %c0_4] : memref<1x128xf32, #tpu.memory_space<vmem>>, vector<1x128xf32>
    %5 = vector.broadcast %4 : vector<1x128xf32> to vector<256x128xf32>
    %6 = arith.addf %3, %5 : vector<256x128xf32>
    %cst_5 = arith.constant 0.000000e+00 : f32
    %7 = vector.broadcast %cst_5 : f32 to vector<256x128xf32>
    %8 = arith.maximumf %6, %7 : vector<256x128xf32>
    %9 = arith.truncf %8 : vector<256x128xf32> to vector<256x128xbf16>
    %c0_6 = arith.constant 0 : index
    %c0_7 = arith.constant 0 : index
    %10 = vector.load %arg4[%c0_6, %c0_7] : memref<128x128xbf16, #tpu.memory_space<vmem>>, vector<128x128xbf16>
    %cst_8 = arith.constant dense<0.000000e+00> : vector<256x128xf32>
    %11 = tpu.matmul %9, %10, %cst_8 {dimension_numbers = #tpu.dot_dimension_numbers<[1], [0], [0], [1], [0, 0, 1, 1], [], []>} : vector<256x128xbf16>, vector<128x128xbf16>, vector<256x128xf32> -> vector<256x128xf32>
    %c0_9 = arith.constant 0 : index
    %c0_10 = arith.constant 0 : index
    %12 = vector.load %arg5[%c0_9, %c0_10] : memref<1x128xf32, #tpu.memory_space<vmem>>, vector<1x128xf32>
    %13 = vector.broadcast %12 : vector<1x128xf32> to vector<256x128xf32>
    %14 = arith.addf %11, %13 : vector<256x128xf32>
    %cst_11 = arith.constant dense<0xFF800000> : vector<256xf32>
    %15 = vector.multi_reduction <maximumf>, %14, %cst_11 [1] : vector<256x128xf32> to vector<256xf32>
    %16 = vector.shape_cast %15 : vector<256xf32> to vector<256x1xf32>
    %17 = vector.broadcast %16 : vector<256x1xf32> to vector<256x128xf32>
    %18 = arith.subf %14, %17 : vector<256x128xf32>
    %19 = math.exp %18 : vector<256x128xf32>
    %cst_12 = arith.constant dense<0.000000e+00> : vector<256xf32>
    %20 = vector.multi_reduction <add>, %19, %cst_12 [1] : vector<256x128xf32> to vector<256xf32>
    %21 = vector.shape_cast %20 : vector<256xf32> to vector<256x1xf32>
    %22 = math.log %21 : vector<256x1xf32>
    %23 = vector.broadcast %22 : vector<256x1xf32> to vector<256x128xf32>
    %24 = arith.subf %18, %23 : vector<256x128xf32>
    %25 = arith.truncf %24 : vector<256x128xf32> to vector<256x128xbf16>
    %c0_13 = arith.constant 0 : index
    %c0_14 = arith.constant 0 : index
    %26 = vector.load %arg6[%c0_13, %c0_14] : memref<256x128xbf16, #tpu.memory_space<vmem>>, vector<256x128xbf16>
    tpu.vector_store %arg6[%c0_13, %c0_14], %25 {strides = array<i32>} : memref<256x128xbf16, #tpu.memory_space<vmem>>, vector<256x128xbf16>,
    return
  }
  func.func @transform_0(%arg0: i32) -> (i32, i32) {
    %c0_i32 = arith.constant 0 : i32
    %c0_i32_0 = arith.constant 0 : i32
    return %arg0, %c0_i32 : i32, i32
  }
  func.func @transform_1(%arg0: i32) -> (i32, i32) {
    %c0_i32 = arith.constant 0 : i32
    %c0_i32_0 = arith.constant 0 : i32
    %c0_i32_1 = arith.constant 0 : i32
    return %c0_i32, %c0_i32_0 : i32, i32
  }
  func.func @transform_2(%arg0: i32) -> (i32, i32) {
    %c0_i32 = arith.constant 0 : i32
    %c0_i32_0 = arith.constant 0 : i32
    %c0_i32_1 = arith.constant 0 : i32
    return %c0_i32, %c0_i32_0 : i32, i32
  }
  func.func @transform_3(%arg0: i32) -> (i32, i32) {
    %c0_i32 = arith.constant 0 : i32
    %c0_i32_0 = arith.constant 0 : i32
    %c0_i32_1 = arith.constant 0 : i32
    return %c0_i32, %c0_i32_0 : i32, i32
  }
  func.func @transform_4(%arg0: i32) -> (i32, i32) {
    %c0_i32 = arith.constant 0 : i32
    %c0_i32_0 = arith.constant 0 : i32
    %c0_i32_1 = arith.constant 0 : i32
    return %c0_i32, %c0_i32_0 : i32, i32
  }
  func.func @transform_5(%arg0: i32) -> (i32, i32) {
    %c0_i32 = arith.constant 0 : i32
    %c0_i32_0 = arith.constant 0 : i32
    return %arg0, %c0_i32 : i32, i32
  }
}

</mosaic_0001>

<bundles_post_ra>
// kernel: tpu_custom_call.1
= control target key start
LH: loop header
LB: loop body
LE: loop exit
PB: predicated region body
PF: predicated region fallthrough
CT: control target
= control target key end

     0   :  { %s1673_s0 = inlined_call_operand.vmem [shape: f32[256,32], index: 0, kind: input, shape index: {}]   ;;  %s1674_s1 = inlined_call_operand.vmem [shape: bf16[32,128], index: 1, kind: input, shape index: {}]   ;;  %s1675_s2 = inlined_call_operand.vmem [shape: f32[1,128], index: 2, kind: input, shape index: {}]   ;;  %s1676_s3 = inlined_call_operand.vmem [shape: bf16[128,128], index: 3, kind: input, shape index: {}]   ;;  %s1677_s4 = inlined_call_operand.vmem [shape: f32[1,128], index: 4, kind: input, shape index: {}]   ;;  %s1678_s5 = inlined_call_operand.hbm [shape: bf16[256,128], index: 5, kind: output, shape index: {}]  }
   0x1   :  { %v892_v0 = vld [vmem:[%s1674_s1 + $0x8] sm:$0xff]  ;;  %v891_v1 = vld [vmem:[%s1674_s1] sm:$0xff] }
   0x2   :  { %145 = vmatpush.bf16.msra.mxu0 %v892_v0  ;;  %v22_v2 = vld [vmem:[%s1673_s0] sm:$0xff]  ;;  %v23_v3 = vld [vmem:[%s1673_s0 + $0x8] sm:$0xff]  ;;  %996 = vmatpush.bf16.msra.mxu3 %v892_v0 }
   0x3   :  { %10 = vsyncpa [#allocation3], 0  ;;  %v54_v4 = vpack.c.bf16 %v23_v3, %v22_v2  ;;  %vm90_vm0 = vcmask 261120   ;;  %v24_v5 = vld [vmem:[%s1673_s0 + $0x10] sm:$0xff]  ;;  %v25_v6 = vld [vmem:[%s1673_s0 + $0x18] sm:$0xff]  ;;  %s823_s27 = sshll.u32 %s1678_s5, 4  ;;  %s824_s27 = int_to_ptr.hbm [resolvable:$true] %s823_s27 }
   0x4   :  { %v55_v7 = vpack.c.bf16 %v25_v6, %v24_v5  ;;  %v26_v8 = vld [vmem:[%s1673_s0 + $0x20] sm:$0xff]  ;;  %v27_v9 = vld [vmem:[%s1673_s0 + $0x28] sm:$0xff]  ;;  %v28_v11 = vld [vmem:[%s1673_s0 + $0x30] sm:$0xff]  ;;  %s1166_s1 = smov 64   ;;  %s1167_s28 = smov 4  }
   0x5   :  { %v56_v10 = vpack.c.bf16 %v27_v9, %v26_v8  ;;  %v29_v12 = vld [vmem:[%s1673_s0 + $0x38] sm:$0xff]  ;;  %v30_v14 = vld [vmem:[%s1673_s0 + $0x40] sm:$0xff]  ;;  %v31_v15 = vld [vmem:[%s1673_s0 + $0x48] sm:$0xff] }
   0x6   :  { %146 = vmatpush.bf16.msra.mxu0 %v891_v1  ;;  %997 = vmatpush.bf16.msra.mxu3 %v891_v1  ;;  %v57_v13 = vpack.c.bf16 %v29_v12, %v28_v11  ;;  %v58_v16 = vpack.c.bf16 %v31_v15, %v30_v14  ;;  %v900_v17 = vld [vmem:[%s1676_s3 + $0x38] sm:$0xff]  ;;  %v32_v18 = vld [vmem:[%s1673_s0 + $0x50] sm:$0xff]  ;;  %v898_v22 = vld [vmem:[%s1676_s3 + $0x28] sm:$0xff] }
   0x7   :  { %344 = vmatpush.bf16.msra.mxu1 %v900_v17  ;;  %998 = vmatpush.bf16.msra.mxu2 %v900_v17  ;;  %v33_v19 = vld [vmem:[%s1673_s0 + $0x58] sm:$0xff]  ;;  %v899_v21 = vld [vmem:[%s1676_s3 + $0x30] sm:$0xff]  ;;  %v897_v23 = vld [vmem:[%s1676_s3 + $0x20] sm:$0xff] }
   0x8   :  { %v59_v20 = vpack.c.bf16 %v33_v19, %v32_v18  ;;  %v34_v24 = vld [vmem:[%s1673_s0 + $0x60] sm:$0xff]  ;;  %v35_v25 = vld [vmem:[%s1673_s0 + $0x68] sm:$0xff]  ;;  %v896_v26 = vld [vmem:[%s1676_s3 + $0x18] sm:$0xff] }
   0x9   :  { %843 = vmatmul.msk.bf16.vlgmr.msra.gmra.mxu0 %vm90_vm0, %v54_v4  ;;  %v60_v27 = vpack.c.bf16 %v35_v25, %v34_v24  ;;  %v895_v28 = vld [vmem:[%s1676_s3 + $0x10] sm:$0xff]  ;;  %v41_v30 = vld [vmem:[%s1673_s0 + $0x98] sm:$0xff]  ;;  %v894_v32 = vld [vmem:[%s1676_s3 + $0x8] sm:$0xff] }
   0xa   :  { %v40_v29 = vld [vmem:[%s1673_s0 + $0x90] sm:$0xff]  ;;  %v893_v33 = vld [vmem:[%s1676_s3] sm:$0xff]  ;;  %v37_v35 = vld [vmem:[%s1673_s0 + $0x78] sm:$0xff] }
   0xb   :  { %345 = vmatpush.bf16.msra.mxu1 %v899_v21  ;;  %999 = vmatpush.bf16.msra.mxu2 %v899_v21  ;;  %v63_v31 = vpack.c.bf16 %v41_v30, %v40_v29  ;;  %v36_v34 = vld [vmem:[%s1673_s0 + $0x70] sm:$0xff]  ;;  %v42_v37 = vld [vmem:[%s1673_s0 + $0xa0] sm:$0xff]  ;;  %v43_v38 = vld [vmem:[%s1673_s0 + $0xa8] sm:$0xff] }
   0xc   :  { %v61_v36 = vpack.c.bf16 %v37_v35, %v36_v34  ;;  %v64_v39 = vpack.c.bf16 %v43_v38, %v42_v37  ;;  %v38_v40 = vld [vmem:[%s1673_s0 + $0x80] sm:$0xff]  ;;  %v39_v41 = vld [vmem:[%s1673_s0 + $0x88] sm:$0xff]  ;;  %v44_v44 = vld [vmem:[%s1673_s0 + $0xb0] sm:$0xff] }
   0xd   :  { %852 = vmatmul.msk.bf16.vlgmr.msra.gmra.mxu3 %vm90_vm0, %v63_v31  ;;  %v62_v42 = vpack.c.bf16 %v39_v41, %v38_v40  ;;  %v45_v45 = vld [vmem:[%s1673_s0 + $0xb8] sm:$0xff]  ;;  %v1313_v46 = vld [vmem:[%s1675_s2] ss:$0 sm:$0xff]  ;;  %v47_v56 = vld [vmem:[%s1673_s0 + $0xc8] sm:$0xff] }
   0xe   :  { %v65_v47 = vpack.c.bf16 %v45_v45, %v44_v44  ;;  %v46_v55 = vld [vmem:[%s1673_s0 + $0xc0] sm:$0xff]  ;;  %v48_v1 = vld [vmem:[%s1673_s0 + $0xd0] sm:$0xff]  ;;  %v49_v2 = vld [vmem:[%s1673_s0 + $0xd8] sm:$0xff] }
   0xf   :  { %346 = vmatpush.bf16.msra.mxu1 %v898_v22  ;;  %1000 = vmatpush.bf16.msra.mxu2 %v898_v22  ;;  %v66_v57 = vpack.c.bf16 %v47_v56, %v46_v55  ;;  %v67_v3 = vpack.c.bf16 %v49_v2, %v48_v1  ;;  %v50_v11 = vld [vmem:[%s1673_s0 + $0xe0] sm:$0xff]  ;;  %v51_v12 = vld [vmem:[%s1673_s0 + $0xe8] sm:$0xff]  ;;  %v52_v21 = vld [vmem:[%s1673_s0 + $0xf0] sm:$0xff] }
  0x10   :  { %v53_v22 = vld [vmem:[%s1673_s0 + $0xf8] sm:$0xff] }
  0x13   :  { %347 = vmatpush.bf16.msra.mxu1 %v897_v23  ;;  %1001 = vmatpush.bf16.msra.mxu2 %v897_v23  ;;  %v69_v23 = vpack.c.bf16 %v53_v22, %v52_v21 }
  0x17   :  { %348 = vmatpush.bf16.msra.mxu1 %v896_v26  ;;  %1002 = vmatpush.bf16.msra.mxu2 %v896_v26 }
  0x19   :  { %844 = vmatmul.msk.bf16.gmra.mxu0 %vm90_vm0, %v55_v7 }
  0x1b   :  { %349 = vmatpush.bf16.msra.mxu1 %v895_v28  ;;  %1003 = vmatpush.bf16.msra.mxu2 %v895_v28 }
  0x1d   :  { %853 = vmatmul.msk.bf16.gmra.mxu3 %vm90_vm0, %v64_v39 }
  0x1f   :  { %350 = vmatpush.bf16.msra.mxu1 %v894_v32  ;;  %1004 = vmatpush.bf16.msra.mxu2 %v894_v32 }
  0x23   :  { %351 = vmatpush.bf16.msra.mxu1 %v893_v33  ;;  %1005 = vmatpush.bf16.msra.mxu2 %v893_v33 }
  0x29   :  { %845 = vmatmul.msk.bf16.gmra.mxu0 %vm90_vm0, %v56_v10 }
  0x2d   :  { %854 = vmatmul.msk.bf16.gmra.mxu3 %vm90_vm0, %v65_v47 }
  0x39   :  { %846 = vmatmul.msk.bf16.gmra.mxu0 %vm90_vm0, %v57_v13  ;;  %v68_v13 = vpack.c.bf16 %v51_v12, %v50_v11 }
  0x3d   :  { %855 = vmatmul.msk.bf16.gmra.mxu3 %vm90_vm0, %v66_v57 }
  0x49   :  { %847 = vmatmul.msk.bf16.gmra.mxu0 %vm90_vm0, %v58_v16 }
  0x4d   :  { %856 = vmatmul.msk.bf16.gmra.mxu3 %vm90_vm0, %v67_v3 }
  0x59   :  { %848 = vmatmul.msk.bf16.gmra.mxu0 %vm90_vm0, %v59_v20 }
  0x5d   :  { %857 = vmatmul.msk.bf16.gmra.mxu3 %vm90_vm0, %v68_v13 }
  0x69   :  { %849 = vmatmul.msk.bf16.gmra.mxu0 %vm90_vm0, %v60_v27 }
  0x6d   :  { %858 = vmatmul.msk.bf16.gmra.mxu3 %vm90_vm0, %v69_v23 }
  0x79   :  { %850 = vmatmul.msk.bf16.gmra.mxu0 %vm90_vm0, %v61_v36 }
  0x86   :  { %v148_v43 = vpop.f32.mrf.mxu0 }
  0x87   :  { %v149_v48 = vadd.f32 %v1313_v46, %v148_v43 }
  0x89   :  { %851 = vmatmul.msk.bf16.gmra.mxu0 %vm90_vm0, %v62_v42  ;;  %v228_v51 = vmax.f32 %v149_v48, 0.0 }
  0x8e   :  { %v150_v49 = vpop.f32.mrf.mxu0 }
  0x8f   :  { %v151_v50 = vadd.f32 %v1313_v46, %v150_v49 }
  0x90   :  { %v193_v45 = vpop.f32.mrf.mxu3 }
  0x91   :  { %v229_v52 = vmax.f32 %v151_v50, 0.0  ;;  %v194_v3 = vadd.f32 %v1313_v46, %v193_v45 }
  0x93   :  { %v260_v53 = vpack.c.bf16 %v229_v52, %v228_v51 }
  0x95   :  { %352 = vmatmul.bf16.vlgmr.msra.gmra.mxu1 %v260_v53 }
  0x96   :  { %v153_v54 = vpop.f32.mrf.mxu0 }
  0x97   :  { %v154_v58 = vadd.f32 %v1313_v46, %v153_v54 }
  0x98   :  { %v195_v50 = vpop.f32.mrf.mxu3 }
  0x99   :  { %v230_v61 = vmax.f32 %v154_v58, 0.0 }
  0x9e   :  { %v155_v59 = vpop.f32.mrf.mxu0 }
  0x9f   :  { %v156_v60 = vadd.f32 %v1313_v46, %v155_v59  ;;  %v1366_v59 = vld [vmem:[%s1677_s4] ss:$0 sm:$0xff]  ;;  %s1165_s4 = smov [#allocation2]  }
  0xa0   :  { %v198_v55 = vpop.f32.mrf.mxu3  ;;  %s821_s25 = sshll.u32 %s1165_s4, 4  ;;  %s822_s25 = int_to_ptr.vmem [resolvable:$true] %s821_s25 }
  0xa1   :  { %v231_v62 = vmax.f32 %v156_v60, 0.0 }
  0xa3   :  { %v261_v63 = vpack.c.bf16 %v231_v62, %v230_v61 }
  0xa5   :  { %357 = vmatmul.bf16.gmra.mxu1 %v261_v63 }
  0xa6   :  { %v158_v0 = vpop.f32.mrf.mxu0 }
  0xa7   :  { %v159_v4 = vadd.f32 %v1313_v46, %v158_v0 }
  0xa8   :  { %v200_v1 = vpop.f32.mrf.mxu3 }
  0xa9   :  { %v232_v7 = vmax.f32 %v159_v4, 0.0  ;;  %v196_v4 = vadd.f32 %v1313_v46, %v195_v50 }
  0xae   :  { %v160_v5 = vpop.f32.mrf.mxu0 }
  0xaf   :  { %v161_v6 = vadd.f32 %v1313_v46, %v160_v5 }
  0xb1   :  { %v233_v8 = vmax.f32 %v161_v6, 0.0  ;;  %v203_v6 = vpop.f32.mrf.mxu3 }
  0xb3   :  { %v262_v9 = vpack.c.bf16 %v233_v8, %v232_v7  ;;  %v246_v7 = vmax.f32 %v194_v3, 0.0  ;;  %v247_v8 = vmax.f32 %v196_v4, 0.0 }
  0xb5   :  { %362 = vmatmul.bf16.gmra.mxu1 %v262_v9  ;;  %v269_v11 = vpack.c.bf16 %v247_v8, %v246_v7 }
  0xb6   :  { %v163_v10 = vpop.f32.mrf.mxu0 }
  0xb7   :  { %v164_v14 = vadd.f32 %v1313_v46, %v163_v10 }
  0xb9   :  { %v234_v17 = vmax.f32 %v164_v14, 0.0  ;;  %v205_v12 = vpop.f32.mrf.mxu3  ;;  %v199_v14 = vadd.f32 %v1313_v46, %v198_v55 }
  0xbe   :  { %v165_v15 = vpop.f32.mrf.mxu0 }
  0xbf   :  { %v166_v16 = vadd.f32 %v1313_v46, %v165_v15  ;;  %v201_v15 = vadd.f32 %v1313_v46, %v200_v1 }
  0xc1   :  { %v235_v18 = vmax.f32 %v166_v16, 0.0 }
  0xc3   :  { %v263_v19 = vpack.c.bf16 %v235_v18, %v234_v17  ;;  %v248_v17 = vmax.f32 %v199_v14, 0.0  ;;  %v249_v18 = vmax.f32 %v201_v15, 0.0 }
  0xc5   :  { %367 = vmatmul.bf16.gmra.mxu1 %v263_v19  ;;  %v270_v22 = vpack.c.bf16 %v249_v18, %v248_v17 }
  0xc6   :  { %v168_v20 = vpop.f32.mrf.mxu0 }
  0xc7   :  { %v169_v24 = vadd.f32 %v1313_v46, %v168_v20  ;;  %v208_v20 = vpop.f32.mrf.mxu3 }
  0xc9   :  { %v236_v27 = vmax.f32 %v169_v24, 0.0  ;;  %v204_v24 = vadd.f32 %v1313_v46, %v203_v6 }
  0xce   :  { %v170_v25 = vpop.f32.mrf.mxu0 }
  0xcf   :  { %v171_v26 = vadd.f32 %v1313_v46, %v170_v25  ;;  %v206_v25 = vadd.f32 %v1313_v46, %v205_v12 }
  0xd1   :  { %v237_v28 = vmax.f32 %v171_v26, 0.0 }
  0xd3   :  { %v264_v29 = vpack.c.bf16 %v237_v28, %v236_v27  ;;  %v210_v27 = vpop.f32.mrf.mxu3  ;;  %v250_v28 = vmax.f32 %v204_v24, 0.0 }
  0xd5   :  { %372 = vmatmul.bf16.gmra.mxu1 %v264_v29  ;;  %v251_v29 = vmax.f32 %v206_v25, 0.0 }
  0xd6   :  { %v173_v30 = vpop.f32.mrf.mxu0 }
  0xd7   :  { %v174_v31 = vadd.f32 %v1313_v46, %v173_v30 }
  0xd9   :  { %v238_v34 = vmax.f32 %v174_v31, 0.0 }
  0xde   :  { %v175_v32 = vpop.f32.mrf.mxu0 }
  0xdf   :  { %v176_v33 = vadd.f32 %v1313_v46, %v175_v32  ;;  %v271_v32 = vpack.c.bf16 %v251_v29, %v250_v28 }
  0xe1   :  { %v239_v35 = vmax.f32 %v176_v33, 0.0  ;;  %v213_v33 = vpop.f32.mrf.mxu3 }
  0xe3   :  { %v265_v36 = vpack.c.bf16 %v239_v35, %v238_v34  ;;  %v209_v35 = vadd.f32 %v1313_v46, %v208_v20 }
  0xe5   :  { %377 = vmatmul.bf16.gmra.mxu1 %v265_v36  ;;  %v211_v36 = vadd.f32 %v1313_v46, %v210_v27 }
  0xe6   :  { %v178_v37 = vpop.f32.mrf.mxu0 }
  0xe7   :  { %v179_v38 = vadd.f32 %v1313_v46, %v178_v37 }
  0xe9   :  { %v240_v41 = vmax.f32 %v179_v38, 0.0  ;;  %v252_v38 = vmax.f32 %v209_v35, 0.0 }
  0xee   :  { %v180_v39 = vpop.f32.mrf.mxu0 }
  0xef   :  { %v181_v40 = vadd.f32 %v1313_v46, %v180_v39  ;;  %v253_v39 = vmax.f32 %v211_v36, 0.0 }
  0xf1   :  { %v241_v42 = vmax.f32 %v181_v40, 0.0  ;;  %v215_v40 = vpop.f32.mrf.mxu3 }
  0xf3   :  { %v266_v43 = vpack.c.bf16 %v241_v42, %v240_v41 }
  0xf5   :  { %382 = vmatmul.bf16.gmra.mxu1 %v266_v43  ;;  %v272_v43 = vpack.c.bf16 %v253_v39, %v252_v38 }
  0xf6   :  { %v183_v44 = vpop.f32.mrf.mxu0 }
  0xf7   :  { %v184_v47 = vadd.f32 %v1313_v46, %v183_v44 }
  0xf9   :  { %v242_v51 = vmax.f32 %v184_v47, 0.0  ;;  %v218_v45 = vpop.f32.mrf.mxu3  ;;  %v214_v47 = vadd.f32 %v1313_v46, %v213_v33 }
  0xfb   :  { %v254_v50 = vmax.f32 %v214_v47, 0.0 }
  0xfe   :  { %v185_v48 = vpop.f32.mrf.mxu0 }
  0xff   :  { %v186_v49 = vadd.f32 %v1313_v46, %v185_v48  ;;  %v216_v48 = vadd.f32 %v1313_v46, %v215_v40 }
 0x101   :  { %v243_v52 = vmax.f32 %v186_v49, 0.0  ;;  %v220_v55 = vpop.f32.mrf.mxu3 }
 0x103   :  { %v267_v53 = vpack.c.bf16 %v243_v52, %v242_v51  ;;  %v255_v51 = vmax.f32 %v216_v48, 0.0 }
 0x105   :  { %387 = vmatmul.bf16.gmra.mxu1 %v267_v53 }
 0x106   :  { %v188_v54 = vpop.f32.mrf.mxu0 }
 0x107   :  { %v189_v56 = vadd.f32 %v1313_v46, %v188_v54  ;;  %v273_v54 = vpack.c.bf16 %v255_v51, %v254_v50 }
 0x109   :  { %v244_v60 = vmax.f32 %v189_v56, 0.0 }
 0x10e   :  { %v190_v57 = vpop.f32.mrf.mxu0 }
 0x10f   :  { %v191_v58 = vadd.f32 %v1313_v46, %v190_v57  ;;  %v219_v57 = vadd.f32 %v1313_v46, %v218_v45 }
 0x111   :  { %v245_v61 = vmax.f32 %v191_v58, 0.0  ;;  %v221_v58 = vadd.f32 %v1313_v46, %v220_v55 }
 0x112   :  { %v353_v62 = vpop.f32.mrf.mxu1 }
 0x113   :  { %v1369_v63 = vadd.f32 %v1366_v59, %v353_v62  ;;  %v268_v0 = vpack.c.bf16 %v245_v61, %v244_v60  ;;  %v223_v61 = vpop.f32.mrf.mxu3  ;;  %v256_v62 = vmax.f32 %v219_v57, 0.0 }
 0x114   :  { %v224_v7 = vadd.f32 %v1313_v46, %v223_v61 }
 0x115   :  { %392 = vmatmul.bf16.vlgmr.msra.gmra.mxu2 %v268_v0  ;;  %433 = vmax.xlane.f32.xlu0 %v1369_v63  ;;  %v257_v0 = vmax.f32 %v221_v58, 0.0 }
 0x117   :  { %v274_v3 = vpack.c.bf16 %v257_v0, %v256_v62 }
 0x11a   :  { %v355_v2 = vpop.f32.mrf.mxu1 }
 0x11b   :  { %v1375_v5 = vadd.f32 %v1366_v59, %v355_v2  ;;  %v225_v4 = vpop.f32.mrf.mxu3 }
 0x11c   :  { %v226_v8 = vadd.f32 %v1313_v46, %v225_v4 }
 0x11d   :  { %435 = vmax.xlane.f32.xlu0 %v1375_v5 }
 0x11e   :  { %v259_v12 = vmax.f32 %v226_v8, 0.0 }
 0x122   :  { %v358_v9 = vpop.f32.mrf.mxu1 }
 0x123   :  { %v1379_v10 = vadd.f32 %v1366_v59, %v358_v9 }
 0x125   :  { %397 = vmatmul.bf16.gmra.mxu2 %v269_v11  ;;  %437 = vmax.xlane.f32.xlu1 %v1379_v10  ;;  %v258_v11 = vmax.f32 %v224_v7, 0.0 }
 0x127   :  { %v275_v15 = vpack.c.bf16 %v259_v12, %v258_v11 }
 0x12a   :  { %v360_v13 = vpop.f32.mrf.mxu1 }
 0x12b   :  { %v1385_v16 = vadd.f32 %v1366_v59, %v360_v13 }
 0x12d   :  { %439 = vmax.xlane.f32.xlu1 %v1385_v16 }
 0x132   :  { %v363_v19 = vpop.f32.mrf.mxu1 }
 0x133   :  { %v1389_v21 = vadd.f32 %v1366_v59, %v363_v19 }
 0x135   :  { %402 = vmatmul.bf16.gmra.mxu2 %v270_v22  ;;  %441 = vmax.xlane.f32.xlu2 %v1389_v21 }
 0x13a   :  { %v365_v23 = vpop.f32.mrf.mxu1 }
 0x13b   :  { %v1395_v26 = vadd.f32 %v1366_v59, %v365_v23 }
 0x13d   :  { %443 = vmax.xlane.f32.xlu2 %v1395_v26 }
 0x142   :  { %v368_v30 = vpop.f32.mrf.mxu1 }
 0x143   :  { %v1399_v31 = vadd.f32 %v1366_v59, %v368_v30 }
 0x145   :  { %407 = vmatmul.bf16.gmra.mxu2 %v271_v32  ;;  %445 = vmax.xlane.f32.xlu0 %v1399_v31 }
 0x14a   :  { %v370_v34 = vpop.f32.mrf.mxu1 }
 0x14b   :  { %v1405_v37 = vadd.f32 %v1366_v59, %v370_v34 }
 0x14d   :  { %447 = vmax.xlane.f32.xlu1 %v1405_v37 }
 0x152   :  { %v373_v41 = vpop.f32.mrf.mxu1 }
 0x153   :  { %v1409_v42 = vadd.f32 %v1366_v59, %v373_v41 }
 0x155   :  { %412 = vmatmul.bf16.gmra.mxu2 %v272_v43  ;;  %449 = vmax.xlane.f32.xlu2 %v1409_v42 }
 0x15a   :  { %v375_v44 = vpop.f32.mrf.mxu1 }
 0x15b   :  { %v1415_v49 = vadd.f32 %v1366_v59, %v375_v44 }
 0x15d   :  { %451 = vmax.xlane.f32.xlu0 %v1415_v49 }
 0x162   :  { %v378_v52 = vpop.f32.mrf.mxu1 }
 0x163   :  { %v1419_v53 = vadd.f32 %v1366_v59, %v378_v52 }
 0x165   :  { %417 = vmatmul.bf16.gmra.mxu2 %v273_v54  ;;  %453 = vmax.xlane.f32.xlu1 %v1419_v53 }
 0x16a   :  { %v380_v56 = vpop.f32.mrf.mxu1 }
 0x16b   :  { %v1425_v60 = vadd.f32 %v1366_v59, %v380_v56 }
 0x16d   :  { %455 = vmax.xlane.f32.xlu2 %v1425_v60 }
 0x172   :  { %v383_v1 = vpop.f32.mrf.mxu1 }
 0x173   :  { %v1429_v2 = vadd.f32 %v1366_v59, %v383_v1 }
 0x175   :  { %422 = vmatmul.bf16.gmra.mxu2 %v274_v3  ;;  %457 = vmax.xlane.f32.xlu0 %v1429_v2 }
 0x17a   :  { %v385_v6 = vpop.f32.mrf.mxu1 }
 0x17b   :  { %v1435_v9 = vadd.f32 %v1366_v59, %v385_v6 }
 0x17d   :  { %459 = vmax.xlane.f32.xlu1 %v1435_v9 }
 0x182   :  { %v388_v13 = vpop.f32.mrf.mxu1 }
 0x183   :  { %v1439_v14 = vadd.f32 %v1366_v59, %v388_v13 }
 0x185   :  { %427 = vmatmul.bf16.gmra.mxu2 %v275_v15  ;;  %461 = vmax.xlane.f32.xlu2 %v1439_v14 }
 0x188   :  { %v434_v17 = vpop.xlane.xlu0 %433 }
 0x189   :  { %v1443_v18 = vsub.f32 %v1369_v63, %v434_v17 }
 0x18a   :  { %v390_v46 = vpop.f32.mrf.mxu1 }
 0x18b   :  { %v529_v19 = vmul.f32 1.442695, %v1443_v18  ;;  %v1447_v20 = vadd.f32 %v1366_v59, %v390_v46 }
 0x18d   :  { %1011 = vpow2.f32 %v529_v19  ;;  %463 = vmax.xlane.f32.xlu0 %v1447_v20 }
 0x190   :  { %v436_v22 = vpop.xlane.xlu0 %435 }
 0x191   :  { %v1451_v23 = vsub.f32 %v1375_v5, %v436_v22 }
 0x193   :  { %v1012_v24 = vpop.eup %1011  ;;  %v531_v25 = vmul.f32 1.442695, %v1451_v23 }
 0x194   :  { %593 = vadd.xlane.f32.xlu2 %v1012_v24 }
 0x195   :  { %1013 = vpow2.f32 %v531_v25 }
 0x198   :  { %v393_v63 = vpop.f32.mrf.mxu2  ;;  %v438_v27 = vpop.xlane.xlu1 %437 }
 0x199   :  { %v1455_v28 = vadd.f32 %v1366_v59, %v393_v63  ;;  %v1458_v29 = vsub.f32 %v1379_v10, %v438_v27 }
 0x19b   :  { %v1014_v30 = vpop.eup %1013  ;;  %v533_v32 = vmul.f32 1.442695, %v1458_v29  ;;  %465 = vmax.xlane.f32.xlu1 %v1455_v28 }
 0x19c   :  { %595 = vadd.xlane.f32.xlu0 %v1014_v30 }
 0x19d   :  { %1015 = vpow2.f32 %v533_v32 }
 0x1a0   :  { %v395_v5 = vpop.f32.mrf.mxu2  ;;  %v440_v33 = vpop.xlane.xlu1 %439 }
 0x1a1   :  { %v1463_v34 = vadd.f32 %v1366_v59, %v395_v5  ;;  %v1466_v35 = vsub.f32 %v1385_v16, %v440_v33 }
 0x1a3   :  { %v1016_v36 = vpop.eup %1015  ;;  %v535_v38 = vmul.f32 1.442695, %v1466_v35  ;;  %467 = vmax.xlane.f32.xlu2 %v1463_v34 }
 0x1a4   :  { %597 = vadd.xlane.f32.xlu1 %v1016_v36 }
 0x1a5   :  { %1017 = vpow2.f32 %v535_v38 }
 0x1a8   :  { %v398_v10 = vpop.f32.mrf.mxu2  ;;  %v442_v39 = vpop.xlane.xlu2 %441 }
 0x1a9   :  { %v1471_v40 = vadd.f32 %v1366_v59, %v398_v10  ;;  %v1474_v41 = vsub.f32 %v1389_v21, %v442_v39 }
 0x1ab   :  { %v1018_v43 = vpop.eup %1017  ;;  %v537_v44 = vmul.f32 1.442695, %v1474_v41  ;;  %469 = vmax.xlane.f32.xlu0 %v1471_v40 }
 0x1ac   :  { %599 = vadd.xlane.f32.xlu2 %v1018_v43 }
 0x1ad   :  { %1019 = vpow2.f32 %v537_v44 }
 0x1b0   :  { %v400_v16 = vpop.f32.mrf.mxu2  ;;  %v444_v45 = vpop.xlane.xlu2 %443 }
 0x1b1   :  { %v1479_v47 = vadd.f32 %v1366_v59, %v400_v16  ;;  %v1482_v48 = vsub.f32 %v1395_v26, %v444_v45 }
 0x1b3   :  { %v1020_v50 = vpop.eup %1019  ;;  %v539_v51 = vmul.f32 1.442695, %v1482_v48  ;;  %471 = vmax.xlane.f32.xlu1 %v1479_v47 }
 0x1b4   :  { %601 = vadd.xlane.f32.xlu0 %v1020_v50 }
 0x1b5   :  { %1021 = vpow2.f32 %v539_v51 }
 0x1b8   :  { %v403_v21 = vpop.f32.mrf.mxu2  ;;  %v446_v52 = vpop.xlane.xlu0 %445 }
 0x1b9   :  { %v1487_v54 = vadd.f32 %v1366_v59, %v403_v21  ;;  %v1490_v55 = vsub.f32 %v1399_v31, %v446_v52 }
 0x1bb   :  { %v1022_v56 = vpop.eup %1021  ;;  %v541_v57 = vmul.f32 1.442695, %v1490_v55  ;;  %473 = vmax.xlane.f32.xlu2 %v1487_v54 }
 0x1bc   :  { %603 = vadd.xlane.f32.xlu1 %v1022_v56 }
 0x1bd   :  { %1023 = vpow2.f32 %v541_v57 }
 0x1c0   :  { %v405_v26 = vpop.f32.mrf.mxu2  ;;  %v448_v58 = vpop.xlane.xlu1 %447 }
 0x1c1   :  { %v1495_v61 = vadd.f32 %v1366_v59, %v405_v26  ;;  %v1498_v62 = vsub.f32 %v1405_v37, %v448_v58 }
 0x1c3   :  { %v1024_v0 = vpop.eup %1023  ;;  %v543_v1 = vmul.f32 1.442695, %v1498_v62  ;;  %475 = vmax.xlane.f32.xlu0 %v1495_v61 }
 0x1c4   :  { %605 = vadd.xlane.f32.xlu2 %v1024_v0 }
 0x1c5   :  { %1025 = vpow2.f32 %v543_v1 }
 0x1c8   :  { %v408_v31 = vpop.f32.mrf.mxu2  ;;  %v450_v3 = vpop.xlane.xlu2 %449 }
 0x1c9   :  { %v1503_v4 = vadd.f32 %v1366_v59, %v408_v31  ;;  %v1506_v6 = vsub.f32 %v1409_v42, %v450_v3 }
 0x1cb   :  { %v1026_v7 = vpop.eup %1025  ;;  %v545_v8 = vmul.f32 1.442695, %v1506_v6  ;;  %477 = vmax.xlane.f32.xlu1 %v1503_v4 }
 0x1cc   :  { %607 = vadd.xlane.f32.xlu0 %v1026_v7 }
 0x1cd   :  { %1027 = vpow2.f32 %v545_v8 }
 0x1d0   :  { %v410_v37 = vpop.f32.mrf.mxu2  ;;  %v452_v11 = vpop.xlane.xlu0 %451 }
 0x1d1   :  { %v1511_v12 = vadd.f32 %v1366_v59, %v410_v37  ;;  %v1514_v13 = vsub.f32 %v1415_v49, %v452_v11 }
 0x1d3   :  { %v1028_v15 = vpop.eup %1027  ;;  %v547_v17 = vmul.f32 1.442695, %v1514_v13  ;;  %479 = vmax.xlane.f32.xlu2 %v1511_v12 }
 0x1d4   :  { %609 = vadd.xlane.f32.xlu1 %v1028_v15 }
 0x1d5   :  { %1029 = vpow2.f32 %v547_v17 }
 0x1d8   :  { %v413_v42 = vpop.f32.mrf.mxu2  ;;  %v454_v46 = vpop.xlane.xlu1 %453 }
 0x1d9   :  { %v1519_v19 = vadd.f32 %v1366_v59, %v413_v42  ;;  %v1522_v22 = vsub.f32 %v1419_v53, %v454_v46 }
 0x1db   :  { %v1030_v24 = vpop.eup %1029  ;;  %v549_v25 = vmul.f32 1.442695, %v1522_v22  ;;  %481 = vmax.xlane.f32.xlu0 %v1519_v19 }
 0x1dc   :  { %611 = vadd.xlane.f32.xlu2 %v1030_v24 }
 0x1dd   :  { %1031 = vpow2.f32 %v549_v25 }
 0x1e0   :  { %v415_v49 = vpop.f32.mrf.mxu2  ;;  %v456_v36 = vpop.xlane.xlu2 %455 }
 0x1e1   :  { %v1527_v63 = vadd.f32 %v1366_v59, %v415_v49 }
 0x1e3   :  { %v1032_v27 = vpop.eup %1031  ;;  %483 = vmax.xlane.f32.xlu1 %v1527_v63 }
 0x1e4   :  { %613 = vadd.xlane.f32.xlu0 %v1032_v27 }
 0x1e8   :  { %v418_v30 = vpop.f32.mrf.mxu2  ;;  %v458_v38 = vpop.xlane.xlu0 %457 }
 0x1e9   :  { %v1531_v32 = vadd.f32 %v1366_v59, %v418_v30  ;;  %v1543_v39 = vsub.f32 %v1429_v2, %v458_v38 }
 0x1eb   :  { %485 = vmax.xlane.f32.xlu2 %v1531_v32  ;;  %v553_v43 = vmul.f32 1.442695, %v1543_v39 }
 0x1ed   :  { %1033 = vpow2.f32 %v553_v43 }
 0x1f0   :  { %v420_v53 = vpop.f32.mrf.mxu2  ;;  %v460_v44 = vpop.xlane.xlu1 %459 }
 0x1f1   :  { %v1535_v5 = vadd.f32 %v1366_v59, %v420_v53  ;;  %v1550_v21 = vsub.f32 %v1435_v9, %v460_v44  ;;  %v1563_v9 = vsub.f32 %v1425_v60, %v456_v36 }
 0x1f3   :  { %487 = vmax.xlane.f32.xlu0 %v1535_v5  ;;  %v555_v2 = vmul.f32 1.442695, %v1550_v21  ;;  %v1034_v0 = vpop.eup %1033  ;;  %v551_v3 = vmul.f32 1.442695, %v1563_v9 }
 0x1f5   :  { %1035 = vpow2.f32 %v555_v2 }
 0x1f8   :  { %v423_v33 = vpop.f32.mrf.mxu2  ;;  %v462_v45 = vpop.xlane.xlu2 %461 }
 0x1f9   :  { %v1539_v10 = vadd.f32 %v1366_v59, %v423_v33  ;;  %v1574_v17 = vsub.f32 %v1439_v14, %v462_v45 }
 0x1fb   :  { %489 = vmax.xlane.f32.xlu1 %v1539_v10  ;;  %v1036_v8 = vpop.eup %1035  ;;  %v557_v24 = vmul.f32 1.442695, %v1574_v17 }
 0x200   :  { %v425_v16 = vpop.f32.mrf.mxu2  ;;  %v464_v51 = vpop.xlane.xlu0 %463 }
 0x201   :  { %v1547_v50 = vadd.f32 %v1366_v59, %v425_v16  ;;  %v1554_v52 = vsub.f32 %v1447_v20, %v464_v51 }
 0x203   :  { %491 = vmax.xlane.f32.xlu2 %v1547_v50  ;;  %v559_v57 = vmul.f32 1.442695, %v1554_v52 }
 0x207   :  { %v594_v26 = vpop.xlane.xlu2 %593 }
 0x208   :  { %v428_v56 = vpop.f32.mrf.mxu2  ;;  %1037 = vlog2.f32 %v594_v26 }
 0x209   :  { %v1559_v58 = vadd.f32 %v1366_v59, %v428_v56  ;;  %1039 = vpow2.f32 %v559_v57 }
 0x20b   :  { %493 = vmax.xlane.f32.xlu0 %v1559_v58  ;;  %617 = vadd.xlane.f32.xlu2 %v1034_v0 }
 0x20e   :  { %v466_v20 = vpop.xlane.xlu1 %465  ;;  %v1038_v15 = vpop.eup %1037 }
 0x20f   :  { %v1566_v1 = vsub.f32 %v1455_v28, %v466_v20  ;;  %v596_v31 = vpop.xlane.xlu0 %595  ;;  %v1040_v60 = vpop.eup %1039  ;;  %v658_v28 = vmul.f32 0.6931472, %v1038_v15 }
 0x210   :  { %1041 = vlog2.f32 %v596_v31  ;;  %v430_v7 = vpop.f32.mrf.mxu2 }
 0x211   :  { %v561_v37 = vmul.f32 1.442695, %v1566_v1  ;;  %v1571_v11 = vadd.f32 %v1366_v59, %v430_v7  ;;  %v721_v59 = vsub.f32 %v1443_v18, %v658_v28 }
 0x213   :  { %1043 = vpow2.f32 %v561_v37  ;;  %495 = vmax.xlane.f32.xlu1 %v1571_v11  ;;  %619 = vadd.xlane.f32.xlu0 %v1036_v8 }
 0x214   :  { %1045 = vpow2.f32 %v551_v3  ;;  %623 = vadd.xlane.f32.xlu2 %v1040_v60 }
 0x215   :  { %1047 = vpow2.f32 %v557_v24 }
 0x216   :  { %v1042_v42 = vpop.eup %1041  ;;  %v468_v46 = vpop.xlane.xlu2 %467 }
 0x217   :  { %v660_v25 = vmul.f32 0.6931472, %v1042_v42  ;;  %v598_v30 = vpop.xlane.xlu1 %597  ;;  %v1581_v33 = vsub.f32 %v1463_v34, %v468_v46 }
 0x218   :  { %1049 = vlog2.f32 %v598_v30 }
 0x219   :  { %v1044_v49 = vpop.eup %1043  ;;  %v722_v27 = vsub.f32 %v1451_v23, %v660_v25  ;;  %v563_v18 = vmul.f32 1.442695, %v1581_v33 }
 0x21a   :  { %v1046_v14 = vpop.eup %1045 }
 0x21b   :  { %v904_v53 = vpack.c.bf16 %v722_v27, %v721_v59  ;;  %615 = vadd.xlane.f32.xlu1 %v1046_v14  ;;  %625 = vadd.xlane.f32.xlu0 %v1044_v49  ;;  %v1048_v23 = vpop.eup %1047 }
 0x21d   :  { %905 = vst [vmem:[#allocation2] sm:$0xff] %v904_v53  }
 0x21e   :  { %v470_v36 = vpop.xlane.xlu0 %469  ;;  %v1050_v16 = vpop.eup %1049 }
 0x21f   :  { %v1584_v38 = vsub.f32 %v1471_v40, %v470_v36  ;;  %v600_v43 = vpop.xlane.xlu2 %599  ;;  %v662_v45 = vmul.f32 0.6931472, %v1050_v16 }
 0x220   :  { %1051 = vlog2.f32 %v600_v43 }
 0x221   :  { %v565_v44 = vmul.f32 1.442695, %v1584_v38  ;;  %v723_v57 = vsub.f32 %v1458_v29, %v662_v45 }
 0x223   :  { %1053 = vpow2.f32 %v565_v44  ;;  %621 = vadd.xlane.f32.xlu1 %v1048_v23 }
 0x224   :  { %1055 = vpow2.f32 %v563_v18 }
 0x226   :  { %v1052_v34 = vpop.eup %1051  ;;  %v472_v51 = vpop.xlane.xlu1 %471 }
 0x227   :  { %v664_v2 = vmul.f32 0.6931472, %v1052_v34  ;;  %v1589_v56 = vsub.f32 %v1479_v47, %v472_v51  ;;  %v602_v20 = vpop.xlane.xlu0 %601 }
 0x229   :  { %v1054_v40 = vpop.eup %1053  ;;  %v724_v26 = vsub.f32 %v1466_v35, %v664_v2  ;;  %v567_v0 = vmul.f32 1.442695, %v1589_v56 }
 0x22a   :  { %v1056_v31 = vpop.eup %1055  ;;  %629 = vadd.xlane.f32.xlu2 %v1054_v40 }
 0x22b   :  { %v909_v3 = vpack.c.bf16 %v724_v26, %v723_v57  ;;  %1057 = vpow2.f32 %v567_v0  ;;  %627 = vadd.xlane.f32.xlu1 %v1056_v31 }
 0x22c   :  { %1059 = vlog2.f32 %v602_v20 }
 0x22d   :  { %981 = vst [vmem:[#allocation2 + $0x8] sm:$0xff] %v909_v3  }
 0x22e   :  { %v474_v7 = vpop.xlane.xlu2 %473 }
 0x22f   :  { %v1595_v8 = vsub.f32 %v1487_v54, %v474_v7  ;;  %v604_v47 = vpop.xlane.xlu1 %603 }
 0x230   :  { %1061 = vlog2.f32 %v604_v47 }
 0x231   :  { %v1058_v37 = vpop.eup %1057  ;;  %v569_v29 = vmul.f32 1.442695, %v1595_v8 }
 0x232   :  { %v1060_v35 = vpop.eup %1059  ;;  %631 = vadd.xlane.f32.xlu0 %v1058_v37 }
 0x233   :  { %1063 = vpow2.f32 %v569_v29  ;;  %v666_v15 = vmul.f32 0.6931472, %v1060_v35 }
 0x235   :  { %v725_v25 = vsub.f32 %v1474_v41, %v666_v15 }
 0x236   :  { %v1062_v60 = vpop.eup %1061  ;;  %v476_v28 = vpop.xlane.xlu0 %475 }
 0x237   :  { %v668_v42 = vmul.f32 0.6931472, %v1062_v60  ;;  %v1599_v46 = vsub.f32 %v1495_v61, %v476_v28  ;;  %v606_v59 = vpop.xlane.xlu2 %605 }
 0x239   :  { %v1064_v24 = vpop.eup %1063  ;;  %v726_v54 = vsub.f32 %v1482_v48, %v668_v42  ;;  %v571_v49 = vmul.f32 1.442695, %v1599_v46 }
 0x23a   :  { %633 = vadd.xlane.f32.xlu1 %v1064_v24 }
 0x23b   :  { %v914_v27 = vpack.c.bf16 %v726_v54, %v725_v25  ;;  %1065 = vpow2.f32 %v571_v49 }
 0x23c   :  { %1067 = vlog2.f32 %v606_v59 }
 0x23d   :  { %982 = vst [vmem:[#allocation2 + $0x10] sm:$0xff] %v914_v27  }
 0x23e   :  { %v478_v30 = vpop.xlane.xlu1 %477 }
 0x23f   :  { %v1605_v14 = vsub.f32 %v1503_v4, %v478_v30  ;;  %v608_v53 = vpop.xlane.xlu0 %607 }
 0x240   :  { %1069 = vlog2.f32 %v608_v53 }
 0x241   :  { %v1066_v61 = vpop.eup %1065  ;;  %v573_v36 = vmul.f32 1.442695, %v1605_v14 }
 0x242   :  { %v1068_v41 = vpop.eup %1067  ;;  %635 = vadd.xlane.f32.xlu2 %v1066_v61 }
 0x243   :  { %1071 = vpow2.f32 %v573_v36  ;;  %v670_v48 = vmul.f32 0.6931472, %v1068_v41 }
 0x245   :  { %v727_v45 = vsub.f32 %v1490_v55, %v670_v48 }
 0x246   :  { %v1070_v43 = vpop.eup %1069  ;;  %v480_v18 = vpop.xlane.xlu2 %479 }
 0x247   :  { %v672_v23 = vmul.f32 0.6931472, %v1070_v43  ;;  %v1609_v44 = vsub.f32 %v1511_v12, %v480_v18  ;;  %v610_v51 = vpop.xlane.xlu1 %609 }
 0x249   :  { %v1072_v16 = vpop.eup %1071  ;;  %v728_v4 = vsub.f32 %v1498_v62, %v672_v23  ;;  %v575_v34 = vmul.f32 1.442695, %v1609_v44 }
 0x24a   :  { %637 = vadd.xlane.f32.xlu0 %v1072_v16 }
 0x24b   :  { %v919_v2 = vpack.c.bf16 %v728_v4, %v727_v45  ;;  %1073 = vpow2.f32 %v575_v34 }
 0x24c   :  { %1075 = vlog2.f32 %v610_v51 }
 0x24d   :  { %983 = vst [vmem:[#allocation2 + $0x18] sm:$0xff] %v919_v2  }
 0x24e   :  { %v482_v40 = vpop.xlane.xlu0 %481 }
 0x24f   :  { %v1615_v57 = vsub.f32 %v1519_v19, %v482_v40  ;;  %v612_v26 = vpop.xlane.xlu2 %611 }
 0x250   :  { %1077 = vlog2.f32 %v612_v26 }
 0x251   :  { %v1074_v12 = vpop.eup %1073  ;;  %v577_v0 = vmul.f32 1.442695, %v1615_v57 }
 0x252   :  { %v1076_v55 = vpop.eup %1075  ;;  %639 = vadd.xlane.f32.xlu1 %v1074_v12 }
 0x253   :  { %1079 = vpow2.f32 %v577_v0  ;;  %v674_v62 = vmul.f32 0.6931472, %v1076_v55 }
 0x255   :  { %v729_v37 = vsub.f32 %v1506_v6, %v674_v62 }
 0x256   :  { %v1078_v20 = vpop.eup %1077  ;;  %v484_v31 = vpop.xlane.xlu1 %483 }
 0x257   :  { %v676_v3 = vmul.f32 0.6931472, %v1078_v20  ;;  %v1619_v7 = vsub.f32 %v1527_v63, %v484_v31  ;;  %v614_v15 = vpop.xlane.xlu0 %613 }
 0x259   :  { %v1080_v47 = vpop.eup %1079  ;;  %v730_v19 = vsub.f32 %v1514_v13, %v676_v3  ;;  %v579_v29 = vmul.f32 1.442695, %v1619_v7 }
 0x25a   :  { %641 = vadd.xlane.f32.xlu2 %v1080_v47 }
 0x25b   :  { %v924_v35 = vpack.c.bf16 %v730_v19, %v729_v37  ;;  %1081 = vpow2.f32 %v579_v29 }
 0x25d   :  { %984 = vst [vmem:[#allocation2 + $0x20] sm:$0xff] %v924_v35  }
 0x25e   :  { %v486_v60 = vpop.xlane.xlu2 %485 }
 0x25f   :  { %v1625_v28 = vsub.f32 %v1531_v32, %v486_v60 }
 0x261   :  { %v1082_v42 = vpop.eup %1081  ;;  %v581_v63 = vmul.f32 1.442695, %v1625_v28 }
 0x262   :  { %643 = vadd.xlane.f32.xlu0 %v1082_v42 }
 0x263   :  { %1083 = vpow2.f32 %v581_v63 }
 0x266   :  { %v488_v24 = vpop.xlane.xlu0 %487 }
 0x267   :  { %v1629_v6 = vsub.f32 %v1535_v5, %v488_v24 }
 0x269   :  { %v1084_v13 = vpop.eup %1083  ;;  %v583_v25 = vmul.f32 1.442695, %v1629_v6 }
 0x26a   :  { %645 = vadd.xlane.f32.xlu1 %v1084_v13 }
 0x26b   :  { %1085 = vpow2.f32 %v583_v25 }
 0x26e   :  { %v490_v54 = vpop.xlane.xlu1 %489 }
 0x26f   :  { %v1633_v49 = vsub.f32 %v1539_v10, %v490_v54 }
 0x271   :  { %v1086_v32 = vpop.eup %1085  ;;  %v585_v59 = vmul.f32 1.442695, %v1633_v49 }
 0x272   :  { %647 = vadd.xlane.f32.xlu2 %v1086_v32 }
 0x273   :  { %1087 = vpow2.f32 %v585_v59 }
 0x276   :  { %v492_v27 = vpop.xlane.xlu2 %491 }
 0x277   :  { %v1637_v30 = vsub.f32 %v1547_v50, %v492_v27 }
 0x279   :  { %v1088_v5 = vpop.eup %1087  ;;  %v587_v53 = vmul.f32 1.442695, %v1637_v30 }
 0x27a   :  { %649 = vadd.xlane.f32.xlu0 %v1088_v5 }
 0x27b   :  { %1089 = vpow2.f32 %v587_v53 }
 0x27e   :  { %v494_v61 = vpop.xlane.xlu0 %493  ;;  %v618_v36 = vpop.xlane.xlu2 %617 }
 0x27f   :  { %v1641_v41 = vsub.f32 %v1559_v58, %v494_v61  ;;  %1091 = vlog2.f32 %v618_v36 }
 0x281   :  { %v1090_v10 = vpop.eup %1089  ;;  %v589_v48 = vmul.f32 1.442695, %v1641_v41 }
 0x282   :  { %651 = vadd.xlane.f32.xlu1 %v1090_v10 }
 0x283   :  { %1093 = vpow2.f32 %v589_v48 }
 0x285   :  { %v1092_v23 = vpop.eup %1091 }
 0x286   :  { %v496_v43 = vpop.xlane.xlu1 %495  ;;  %v620_v18 = vpop.xlane.xlu0 %619  ;;  %v682_v58 = vmul.f32 0.6931472, %v1092_v23 }
 0x287   :  { %v1645_v50 = vsub.f32 %v1571_v11, %v496_v43  ;;  %1095 = vlog2.f32 %v620_v18  ;;  %v624_v26 = vpop.xlane.xlu2 %623 }
 0x288   :  { %1097 = vlog2.f32 %v614_v15  ;;  %v733_v40 = vsub.f32 %v1543_v39, %v682_v58 }
 0x289   :  { %v1094_v16 = vpop.eup %1093  ;;  %v591_v45 = vmul.f32 1.442695, %v1645_v50 }
 0x28a   :  { %653 = vadd.xlane.f32.xlu2 %v1094_v16 }
 0x28b   :  { %1099 = vpow2.f32 %v591_v45 }
 0x28d   :  { %v1096_v4 = vpop.eup %1095 }
 0x28e   :  { %v684_v34 = vmul.f32 0.6931472, %v1096_v4  ;;  %v616_v51 = vpop.xlane.xlu1 %615  ;;  %v1098_v2 = vpop.eup %1097 }
 0x28f   :  { %1101 = vlog2.f32 %v616_v51  ;;  %v678_v55 = vmul.f32 0.6931472, %v1098_v2  ;;  %v626_v37 = vpop.xlane.xlu0 %625 }
 0x290   :  { %v734_v11 = vsub.f32 %v1550_v21, %v684_v34  ;;  %1103 = vlog2.f32 %v624_v26 }
 0x291   :  { %v1100_v12 = vpop.eup %1099  ;;  %v731_v3 = vsub.f32 %v1522_v22, %v678_v55 }
 0x292   :  { %v934_v0 = vpack.c.bf16 %v734_v11, %v733_v40  ;;  %655 = vadd.xlane.f32.xlu0 %v1100_v12 }
 0x294   :  { %986 = vst [vmem:[#allocation2 + $0x30] sm:$0xff] %v934_v0  }
 0x295   :  { %v1102_v62 = vpop.eup %1101 }
 0x296   :  { %v680_v20 = vmul.f32 0.6931472, %v1102_v62  ;;  %v622_v31 = vpop.xlane.xlu1 %621  ;;  %v1104_v19 = vpop.eup %1103 }
 0x297   :  { %1105 = vlog2.f32 %v622_v31  ;;  %v688_v29 = vmul.f32 0.6931472, %v1104_v19 }
 0x298   :  { %v732_v47 = vsub.f32 %v1563_v9, %v680_v20  ;;  %1107 = vlog2.f32 %v626_v37 }
 0x299   :  { %v736_v42 = vsub.f32 %v1554_v52, %v688_v29 }
 0x29a   :  { %v929_v39 = vpack.c.bf16 %v732_v47, %v731_v3 }
 0x29c   :  { %985 = vst [vmem:[#allocation2 + $0x28] sm:$0xff] %v929_v39  }
 0x29d   :  { %v1106_v21 = vpop.eup %1105  ;;  %v630_v60 = vpop.xlane.xlu2 %629 }
 0x29e   :  { %v686_v35 = vmul.f32 0.6931472, %v1106_v21  ;;  %v628_v15 = vpop.xlane.xlu1 %627  ;;  %v1108_v24 = vpop.eup %1107 }
 0x29f   :  { %1109 = vlog2.f32 %v628_v15  ;;  %v690_v22 = vmul.f32 0.6931472, %v1108_v24 }
 0x2a0   :  { %v735_v63 = vsub.f32 %v1574_v17, %v686_v35  ;;  %1111 = vlog2.f32 %v630_v60 }
 0x2a1   :  { %v737_v59 = vsub.f32 %v1566_v1, %v690_v22 }
 0x2a2   :  { %v939_v13 = vpack.c.bf16 %v736_v42, %v735_v63 }
 0x2a4   :  { %987 = vst [vmem:[#allocation2 + $0x38] sm:$0xff] %v939_v13  }
 0x2a5   :  { %v1110_v9 = vpop.eup %1109  ;;  %v632_v25 = vpop.xlane.xlu0 %631 }
 0x2a6   :  { %v692_v54 = vmul.f32 0.6931472, %v1110_v9  ;;  %1113 = vlog2.f32 %v632_v25  ;;  %v1112_v32 = vpop.eup %1111 }
 0x2a7   :  { %v694_v53 = vmul.f32 0.6931472, %v1112_v32 }
 0x2a8   :  { %v738_v27 = vsub.f32 %v1581_v33, %v692_v54 }
 0x2a9   :  { %v739_v17 = vsub.f32 %v1584_v38, %v694_v53 }
 0x2aa   :  { %v944_v5 = vpack.c.bf16 %v738_v27, %v737_v59 }
 0x2ac   :  { %v1114_v61 = vpop.eup %1113  ;;  %988 = vst [vmem:[#allocation2 + $0x40] sm:$0xff] %v944_v5  }
 0x2ad   :  { %v696_v52 = vmul.f32 0.6931472, %v1114_v61  ;;  %v634_v10 = vpop.xlane.xlu1 %633 }
 0x2ae   :  { %1115 = vlog2.f32 %v634_v10 }
 0x2af   :  { %v740_v36 = vsub.f32 %v1589_v56, %v696_v52 }
 0x2b1   :  { %v949_v48 = vpack.c.bf16 %v740_v36, %v739_v17 }
 0x2b3   :  { %989 = vst [vmem:[#allocation2 + $0x48] sm:$0xff] %v949_v48  }
 0x2b4   :  { %v1116_v18 = vpop.eup %1115 }
 0x2b5   :  { %v636_v43 = vpop.xlane.xlu2 %635  ;;  %v698_v23 = vmul.f32 0.6931472, %v1116_v18 }
 0x2b6   :  { %1117 = vlog2.f32 %v636_v43 }
 0x2b7   :  { %v741_v33 = vsub.f32 %v1595_v8, %v698_v23 }
 0x2bc   :  { %v1118_v1 = vpop.eup %1117 }
 0x2bd   :  { %v700_v16 = vmul.f32 0.6931472, %v1118_v1  ;;  %v638_v58 = vpop.xlane.xlu0 %637 }
 0x2be   :  { %1119 = vlog2.f32 %v638_v58 }
 0x2bf   :  { %v742_v45 = vsub.f32 %v1599_v46, %v700_v16 }
 0x2c1   :  { %v954_v4 = vpack.c.bf16 %v742_v45, %v741_v33 }
 0x2c3   :  { %990 = vst [vmem:[#allocation2 + $0x50] sm:$0xff] %v954_v4  }
 0x2c4   :  { %v1120_v56 = vpop.eup %1119 }
 0x2c5   :  { %v640_v38 = vpop.xlane.xlu1 %639  ;;  %v702_v34 = vmul.f32 0.6931472, %v1120_v56 }
 0x2c6   :  { %1121 = vlog2.f32 %v640_v38 }
 0x2c7   :  { %v743_v40 = vsub.f32 %v1605_v14, %v702_v34 }
 0x2cc   :  { %v1122_v51 = vpop.eup %1121 }
 0x2cd   :  { %v704_v2 = vmul.f32 0.6931472, %v1122_v51  ;;  %v642_v11 = vpop.xlane.xlu2 %641 }
 0x2ce   :  { %1123 = vlog2.f32 %v642_v11 }
 0x2cf   :  { %v744_v26 = vsub.f32 %v1609_v44, %v704_v2 }
 0x2d1   :  { %v959_v12 = vpack.c.bf16 %v744_v26, %v743_v40 }
 0x2d3   :  { %991 = vst [vmem:[#allocation2 + $0x58] sm:$0xff] %v959_v12  }
 0x2d4   :  { %v1124_v46 = vpop.eup %1123 }
 0x2d5   :  { %v644_v8 = vpop.xlane.xlu0 %643  ;;  %v706_v0 = vmul.f32 0.6931472, %v1124_v46 }
 0x2d6   :  { %1125 = vlog2.f32 %v644_v8 }
 0x2d7   :  { %v745_v20 = vsub.f32 %v1615_v57, %v706_v0 }
 0x2dc   :  { %v1126_v55 = vpop.eup %1125 }
 0x2dd   :  { %v708_v62 = vmul.f32 0.6931472, %v1126_v55  ;;  %v646_v3 = vpop.xlane.xlu1 %645 }
 0x2de   :  { %1127 = vlog2.f32 %v646_v3 }
 0x2df   :  { %v746_v31 = vsub.f32 %v1619_v7, %v708_v62 }
 0x2e1   :  { %v964_v47 = vpack.c.bf16 %v746_v31, %v745_v20 }
 0x2e3   :  { %992 = vst [vmem:[#allocation2 + $0x60] sm:$0xff] %v964_v47  }
 0x2e4   :  { %v1128_v44 = vpop.eup %1127 }
 0x2e5   :  { %v648_v14 = vpop.xlane.xlu2 %647  ;;  %v710_v37 = vmul.f32 0.6931472, %v1128_v44 }
 0x2e6   :  { %1129 = vlog2.f32 %v648_v14 }
 0x2e7   :  { %v747_v29 = vsub.f32 %v1625_v28, %v710_v37 }
 0x2ec   :  { %v1130_v19 = vpop.eup %1129 }
 0x2ed   :  { %v712_v39 = vmul.f32 0.6931472, %v1130_v19  ;;  %v650_v35 = vpop.xlane.xlu0 %649 }
 0x2ee   :  { %1131 = vlog2.f32 %v650_v35 }
 0x2ef   :  { %v748_v21 = vsub.f32 %v1629_v6, %v712_v39 }
 0x2f1   :  { %v969_v15 = vpack.c.bf16 %v748_v21, %v747_v29 }
 0x2f3   :  { %993 = vst [vmem:[#allocation2 + $0x68] sm:$0xff] %v969_v15  }
 0x2f4   :  { %v1132_v7 = vpop.eup %1131 }
 0x2f5   :  { %v652_v57 = vpop.xlane.xlu1 %651  ;;  %v714_v60 = vmul.f32 0.6931472, %v1132_v7 }
 0x2f6   :  { %1133 = vlog2.f32 %v652_v57 }
 0x2f7   :  { %v749_v24 = vsub.f32 %v1633_v49, %v714_v60 }
 0x2fc   :  { %v1134_v42 = vpop.eup %1133 }
 0x2fd   :  { %v716_v63 = vmul.f32 0.6931472, %v1134_v42  ;;  %v654_v22 = vpop.xlane.xlu2 %653 }
 0x2fe   :  { %1135 = vlog2.f32 %v654_v22 }
 0x2ff   :  { %v750_v13 = vsub.f32 %v1637_v30, %v716_v63 }
 0x301   :  { %v974_v9 = vpack.c.bf16 %v750_v13, %v749_v24 }
 0x303   :  { %994 = vst [vmem:[#allocation2 + $0x70] sm:$0xff] %v974_v9  }
 0x304   :  { %v1136_v6 = vpop.eup %1135 }
 0x305   :  { %v656_v28 = vpop.xlane.xlu0 %655  ;;  %v718_v25 = vmul.f32 0.6931472, %v1136_v6 }
 0x306   :  { %1137 = vlog2.f32 %v656_v28 }
 0x307   :  { %v751_v49 = vsub.f32 %v1641_v41, %v718_v25 }
 0x30c   :  { %v1138_v54 = vpop.eup %1137 }
 0x30d   :  { %v720_v32 = vmul.f32 0.6931472, %v1138_v54 }
 0x30f   :  { %v752_v30 = vsub.f32 %v1645_v50, %v720_v32 }
 0x311   :  { %v979_v59 = vpack.c.bf16 %v752_v30, %v751_v49 }
 0x313   :  { %995 = vst [vmem:[#allocation2 + $0x78] sm:$0xff] %v979_v59  }
 0x314   :  { %829 = dma.vmem_to_hbm [thread:$0]  %s822_s25, 2048, %s824_s27, [#allocation3], %s1166_s1, %s1166_s1, %s1167_s28  }
 0x315   :  { %1163 = dma.done.wait [#allocation3], 2048  }
 0x316   :  { %1164 = vsyncadd [#allocation3], 4294965248 }
 0x317   :  { %834 = vsyncpa [#allocation3], 1 }

</bundles_post_ra>
